<compile_context>
chip_gen: v7x
topology: tpu7x:2x2x1
jax: 0.10.0
libtpu: 0.0.40
codegen_flags: <defaults>
</compile_context>

<pallas_src>
import functools

import jax
import jax.numpy as jnp
from jax.experimental import pallas as pl
from jax.experimental.pallas import tpu as pltpu


def textcnn_kernel(x_ref, w_all_ref, b_all_ref, fc_w_ref, fc_b_ref, out_ref, *,
                   kernel_sizes, co):
    """
    x_ref    : (TN, W, D)        bf16   embedded tokens (batch block)
    w_all_ref: (D, sum_i K_i*Co) bf16   all conv weights, branch-major, K-major within branch
    b_all_ref: (1, nK*Co)        f32    conv biases, branch-major
    fc_w_ref : (nK*Co, C_pad)    bf16   fc weight, zero-padded to 128 lanes
    fc_b_ref : (1, C_pad)        f32    fc bias, zero-padded
    out_ref  : (TN, C_pad)       f32    logits (lane-dense)
    """
    TN, W, _ = x_ref.shape
    tot = w_all_ref.shape[-1]

    # --- one wide MXU call for every conv branch at once --------------------------------
    x2d = x_ref[...].reshape(TN * W, x_ref.shape[-1])                       # bf16
    y = jnp.dot(x2d, w_all_ref[...], preferred_element_type=jnp.float32)    # (TN*W, tot) f32
    y = y.reshape(TN, W, tot)

    b_all = b_all_ref[...]      # (1, nK*Co) f32
    fc_w = fc_w_ref[...]        # (nK*Co, C_pad) bf16

    logits = jnp.zeros(out_ref.shape, jnp.float32)
    off = 0
    for bi, K in enumerate(kernel_sizes):
        L = W - K + 1
        # conv[n, t, c] = sum_k y[n, t+k, off + k*Co + c]  -- shift-add on the conv OUTPUT
        acc = y[:, 0:L, off:off + co]
        for k in range(1, K):
            acc = acc + y[:, k:k + L, off + k * co:off + (k + 1) * co]
        # ReLU is monotone => max_t relu(acc + b) == relu(max_t(acc) + b):
        # reduce first, then do bias+ReLU on the tiny (TN, Co) tile.
        feat = jnp.maximum(jnp.max(acc, axis=1) + b_all[:, bi * co:(bi + 1) * co], 0.0)
        # TODO(synk): nn.Dropout is identity at inference; training-mode masking omitted.
        logits = logits + jnp.dot(feat.astype(jnp.bfloat16),
                                  fc_w[bi * co:(bi + 1) * co, :],
                                  preferred_element_type=jnp.float32)
        off += K * co

    out_ref[...] = (logits + fc_b_ref[...]).astype(out_ref.dtype)


def textcnn_forward(tokens, embed_table, conv_ws, conv_bs, fc_w, fc_b, kernel_sizes,
                    *, batch_block=128):
    """conv_ws[i]: (K_i, D, Co); conv_bs[i]: (1, Co); fc_w: (len(Ks)*Co, C); fc_b: (1, C)."""
    N, W = tokens.shape
    D = embed_table.shape[1]
    Co = conv_ws[0].shape[-1]
    C = fc_w.shape[-1]
    nK = len(kernel_sizes)
    assert all(W >= K for K in kernel_sizes), "sequence shorter than a conv kernel"

    # Embedding gather stays in the wrapper (glue). bf16 halves the HBM bytes of the
    # (N, W, D) intermediate the kernel streams back in.
    # TODO(synk): fuse the gather into the kernel via scalar-prefetch row gather.
    x = jnp.take(embed_table, tokens, axis=0).astype(jnp.bfloat16)           # (N, W, D)

    # Fused conv weight: branch i contributes w_i transposed to (D, K_i*Co), K-major.
    w_all = jnp.concatenate(
        [jnp.transpose(w, (1, 0, 2)).reshape(D, K * Co).astype(jnp.bfloat16)
         for w, K in zip(conv_ws, kernel_sizes)], axis=1)                    # (D, sum K_i*Co)
    b_all = jnp.concatenate([b.reshape(1, Co) for b in conv_bs], axis=1).astype(jnp.float32)

    # Lane-dense fc output slab (padded to a multiple of 128 lanes).
    C_pad = ((C + 127) // 128) * 128
    fc_w_p = jnp.zeros((nK * Co, C_pad), jnp.bfloat16).at[:, :C].set(fc_w.astype(jnp.bfloat16))
    fc_b_p = jnp.zeros((1, C_pad), jnp.float32).at[:, :C].set(fc_b.reshape(1, C).astype(jnp.float32))

    # Batch grid: one block for small N, otherwise 128-row blocks (keeps double-buffered
    # x blocks tiny relative to v7x's 64 MiB VMEM while amortizing per-step overhead).
    if N <= batch_block:
        TN, N_pad = N, N
    else:
        TN = batch_block
        N_pad = ((N + TN - 1) // TN) * TN
    if N_pad != N:
        x = jnp.pad(x, ((0, N_pad - N), (0, 0), (0, 0)))

    tot = w_all.shape[1]
    kernel = functools.partial(textcnn_kernel, kernel_sizes=tuple(kernel_sizes), co=Co)

    out_padded = pl.pallas_call(
        kernel,
        out_shape=jax.ShapeDtypeStruct((N_pad, C_pad), jnp.float32),
        grid=(pl.cdiv(N_pad, TN),),
        in_specs=[
            pl.BlockSpec((TN, W, D), lambda i: (i, 0, 0)),      # batch-tiled activations
            pl.BlockSpec((D, tot), lambda i: (0, 0)),           # resident weights
            pl.BlockSpec((1, nK * Co), lambda i: (0, 0)),
            pl.BlockSpec((nK * Co, C_pad), lambda i: (0, 0)),
            pl.BlockSpec((1, C_pad), lambda i: (0, 0)),
        ],
        out_specs=pl.BlockSpec((TN, C_pad), lambda i: (i, 0)),
        compiler_params=pltpu.CompilerParams(
            dimension_semantics=("parallel",),
            vmem_limit_bytes=32 * 1024 * 1024,
        ),
    )(x, w_all, b_all, fc_w_p, fc_b_p)

    return out_padded[:N, :C]


def textcnn_reference(tokens, embed_table, conv_ws, conv_bs, fc_w, fc_b, kernel_sizes):
    """Pure-JAX f32 reference of the PyTorch forward (for correctness checking only)."""
    x = jnp.take(embed_table, tokens, axis=0)                                # (N, W, D)
    feats = []
    for w, b, K in zip(conv_ws, conv_bs, kernel_sizes):
        L = x.shape[1] - K + 1
        acc = sum(jnp.einsum("nld,dc->nlc", x[:, k:k + L, :], w[k]) for k in range(K))
        acc = jax.nn.relu(acc + b[None, :, :])
        feats.append(jnp.max(acc, axis=1))
    feat = jnp.concatenate(feats, axis=1)
    return feat @ fc_w + fc_b


if __name__ == "__main__":
    # Small, deterministic synthetic configuration (mirrors TextCNN.__init__ shapes).
    V = 50            # embed_num (vocab)
    D = 32            # embed_dim
    C = 4             # class_num
    Co = 8            # kernel_num
    Ks = (3, 4, 5)    # kernel_sizes
    N, W = 2, 16      # batch, sequence length

    key = jax.random.PRNGKey(0)
    keys = jax.random.split(key, 9)

    embed_table = jax.random.normal(keys[0], (V, D), jnp.float32) * 0.1
    conv_ws = [jax.random.normal(keys[1 + i], (K, D, Co), jnp.float32) * 0.1
               for i, K in enumerate(Ks)]
    conv_bs = [jax.random.normal(keys[4 + i], (1, Co), jnp.float32) * 0.1
               for i in range(len(Ks))]
    fc_w = jax.random.normal(keys[7], (len(Ks) * Co, C), jnp.float32) * 0.1
    fc_b = jax.random.normal(keys[8], (1, C), jnp.float32) * 0.1

    tokens = jax.random.randint(jax.random.PRNGKey(42), (N, W), 0, V, dtype=jnp.int32)

    logits = textcnn_forward(tokens, embed_table, conv_ws, conv_bs, fc_w, fc_b, Ks)
    logits = jax.block_until_ready(logits)
    assert logits.shape == (N, C), logits.shape
    assert jnp.all(jnp.isfinite(logits))

    ref = textcnn_reference(tokens, embed_table, conv_ws, conv_bs, fc_w, fc_b, Ks)
    assert jnp.allclose(logits, ref, atol=5e-2, rtol=5e-2), (logits, ref)

    print("KERNEL_OK")
</pallas_src>

<mosaic_0001>
module attributes {stable_mosaic.version = 11 : i64} {
  func.func @textcnn_kernel(%arg0: i32, %arg1: memref<2x16x32xbf16, #tpu.memory_space<vmem>>, %arg2: memref<32x96xbf16, #tpu.memory_space<vmem>>, %arg3: memref<1x24xf32, #tpu.memory_space<vmem>>, %arg4: memref<24x128xbf16, #tpu.memory_space<vmem>>, %arg5: memref<1x128xf32, #tpu.memory_space<vmem>>, %arg6: memref<2x128xf32, #tpu.memory_space<vmem>>) attributes {dimension_semantics = [#tpu.dimension_semantics<parallel>], iteration_bounds = array<i64: 1>, scalar_prefetch = 0 : i64, scratch_operands = 0 : i64, tpu.core_type = #tpu.core_type<tc>, window_params = [{transform_indices = @transform_0, window_bounds = array<i64: 2, 16, 32>}, {pipeline_mode = #tpu.pipeline_mode<synchronous>, transform_indices = @transform_1, window_bounds = array<i64: 32, 96>}, {pipeline_mode = #tpu.pipeline_mode<synchronous>, transform_indices = @transform_2, window_bounds = array<i64: 1, 24>}, {pipeline_mode = #tpu.pipeline_mode<synchronous>, transform_indices = @transform_3, window_bounds = array<i64: 24, 128>}, {pipeline_mode = #tpu.pipeline_mode<synchronous>, transform_indices = @transform_4, window_bounds = array<i64: 1, 128>}, {transform_indices = @transform_5, window_bounds = array<i64: 2, 128>}]} {
    %c0 = arith.constant 0 : index
    %c0_0 = arith.constant 0 : index
    %c0_1 = arith.constant 0 : index
    %0 = vector.load %arg1[%c0, %c0_0, %c0_1] : memref<2x16x32xbf16, #tpu.memory_space<vmem>>, vector<2x16x32xbf16>
    %1 = vector.shape_cast %0 : vector<2x16x32xbf16> to vector<32x32xbf16>
    %c0_2 = arith.constant 0 : index
    %c0_3 = arith.constant 0 : index
    %2 = vector.load %arg2[%c0_2, %c0_3] : memref<32x96xbf16, #tpu.memory_space<vmem>>, vector<32x96xbf16>
    %cst = arith.constant dense<0.000000e+00> : vector<32x96xf32>
    %3 = tpu.matmul %1, %2, %cst {dimension_numbers = #tpu.dot_dimension_numbers<[1], [0], [0], [1], [0, 0, 1, 1], [], []>} : vector<32x32xbf16>, vector<32x96xbf16>, vector<32x96xf32> -> vector<32x96xf32>
    %4 = vector.shape_cast %3 : vector<32x96xf32> to vector<2x16x96xf32>
    %c0_4 = arith.constant 0 : index
    %c0_5 = arith.constant 0 : index
    %5 = vector.load %arg3[%c0_4, %c0_5] : memref<1x24xf32, #tpu.memory_space<vmem>>, vector<1x24xf32>
    %c0_6 = arith.constant 0 : index
    %c0_7 = arith.constant 0 : index
    %6 = vector.load %arg4[%c0_6, %c0_7] : memref<24x128xbf16, #tpu.memory_space<vmem>>, vector<24x128xbf16>
    %cst_8 = arith.constant 0.000000e+00 : f32
    %7 = vector.broadcast %cst_8 : f32 to vector<2x128xf32>
    %8 = vector.extract_strided_slice %4 {offsets = [0, 0, 0], sizes = [2, 14, 8], strides = [1, 1, 1]} : vector<2x16x96xf32> to vector<2x14x8xf32>
    %9 = vector.extract_strided_slice %4 {offsets = [0, 1, 8], sizes = [2, 14, 8], strides = [1, 1, 1]} : vector<2x16x96xf32> to vector<2x14x8xf32>
    %10 = arith.addf %8, %9 : vector<2x14x8xf32>
    %11 = vector.extract_strided_slice %4 {offsets = [0, 2, 16], sizes = [2, 14, 8], strides = [1, 1, 1]} : vector<2x16x96xf32> to vector<2x14x8xf32>
    %12 = arith.addf %10, %11 : vector<2x14x8xf32>
    %cst_9 = arith.constant dense<0xFF800000> : vector<2x8xf32>
    %13 = vector.multi_reduction <maximumf>, %12, %cst_9 [1] : vector<2x14x8xf32> to vector<2x8xf32>
    %14 = vector.extract_strided_slice %5 {offsets = [0, 0], sizes = [1, 8], strides = [1, 1]} : vector<1x24xf32> to vector<1x8xf32>
    %15 = vector.broadcast %14 : vector<1x8xf32> to vector<2x8xf32>
    %16 = arith.addf %13, %15 : vector<2x8xf32>
    %cst_10 = arith.constant 0.000000e+00 : f32
    %17 = vector.broadcast %cst_10 : f32 to vector<2x8xf32>
    %18 = arith.maximumf %16, %17 : vector<2x8xf32>
    %19 = arith.truncf %18 : vector<2x8xf32> to vector<2x8xbf16>
    %20 = vector.extract_strided_slice %6 {offsets = [0, 0], sizes = [8, 128], strides = [1, 1]} : vector<24x128xbf16> to vector<8x128xbf16>
    %cst_11 = arith.constant dense<0.000000e+00> : vector<2x128xf32>
    %21 = tpu.matmul %19, %20, %cst_11 {dimension_numbers = #tpu.dot_dimension_numbers<[1], [0], [0], [1], [0, 0, 1, 1], [], []>} : vector<2x8xbf16>, vector<8x128xbf16>, vector<2x128xf32> -> vector<2x128xf32>
    %22 = arith.addf %7, %21 : vector<2x128xf32>
    %23 = vector.extract_strided_slice %4 {offsets = [0, 0, 24], sizes = [2, 13, 8], strides = [1, 1, 1]} : vector<2x16x96xf32> to vector<2x13x8xf32>
    %24 = vector.extract_strided_slice %4 {offsets = [0, 1, 32], sizes = [2, 13, 8], strides = [1, 1, 1]} : vector<2x16x96xf32> to vector<2x13x8xf32>
    %25 = arith.addf %23, %24 : vector<2x13x8xf32>
    %26 = vector.extract_strided_slice %4 {offsets = [0, 2, 40], sizes = [2, 13, 8], strides = [1, 1, 1]} : vector<2x16x96xf32> to vector<2x13x8xf32>
    %27 = arith.addf %25, %26 : vector<2x13x8xf32>
    %28 = vector.extract_strided_slice %4 {offsets = [0, 3, 48], sizes = [2, 13, 8], strides = [1, 1, 1]} : vector<2x16x96xf32> to vector<2x13x8xf32>
    %29 = arith.addf %27, %28 : vector<2x13x8xf32>
    %cst_12 = arith.constant dense<0xFF800000> : vector<2x8xf32>
    %30 = vector.multi_reduction <maximumf>, %29, %cst_12 [1] : vector<2x13x8xf32> to vector<2x8xf32>
    %31 = vector.extract_strided_slice %5 {offsets = [0, 8], sizes = [1, 8], strides = [1, 1]} : vector<1x24xf32> to vector<1x8xf32>
    %32 = vector.broadcast %31 : vector<1x8xf32> to vector<2x8xf32>
    %33 = arith.addf %30, %32 : vector<2x8xf32>
    %cst_13 = arith.constant 0.000000e+00 : f32
    %34 = vector.broadcast %cst_13 : f32 to vector<2x8xf32>
    %35 = arith.maximumf %33, %34 : vector<2x8xf32>
    %36 = arith.truncf %35 : vector<2x8xf32> to vector<2x8xbf16>
    %37 = vector.extract_strided_slice %6 {offsets = [8, 0], sizes = [8, 128], strides = [1, 1]} : vector<24x128xbf16> to vector<8x128xbf16>
    %cst_14 = arith.constant dense<0.000000e+00> : vector<2x128xf32>
    %38 = tpu.matmul %36, %37, %cst_14 {dimension_numbers = #tpu.dot_dimension_numbers<[1], [0], [0], [1], [0, 0, 1, 1], [], []>} : vector<2x8xbf16>, vector<8x128xbf16>, vector<2x128xf32> -> vector<2x128xf32>
    %39 = arith.addf %22, %38 : vector<2x128xf32>
    %40 = vector.extract_strided_slice %4 {offsets = [0, 0, 56], sizes = [2, 12, 8], strides = [1, 1, 1]} : vector<2x16x96xf32> to vector<2x12x8xf32>
    %41 = vector.extract_strided_slice %4 {offsets = [0, 1, 64], sizes = [2, 12, 8], strides = [1, 1, 1]} : vector<2x16x96xf32> to vector<2x12x8xf32>
    %42 = arith.addf %40, %41 : vector<2x12x8xf32>
    %43 = vector.extract_strided_slice %4 {offsets = [0, 2, 72], sizes = [2, 12, 8], strides = [1, 1, 1]} : vector<2x16x96xf32> to vector<2x12x8xf32>
    %44 = arith.addf %42, %43 : vector<2x12x8xf32>
    %45 = vector.extract_strided_slice %4 {offsets = [0, 3, 80], sizes = [2, 12, 8], strides = [1, 1, 1]} : vector<2x16x96xf32> to vector<2x12x8xf32>
    %46 = arith.addf %44, %45 : vector<2x12x8xf32>
    %47 = vector.extract_strided_slice %4 {offsets = [0, 4, 88], sizes = [2, 12, 8], strides = [1, 1, 1]} : vector<2x16x96xf32> to vector<2x12x8xf32>
    %48 = arith.addf %46, %47 : vector<2x12x8xf32>
    %cst_15 = arith.constant dense<0xFF800000> : vector<2x8xf32>
    %49 = vector.multi_reduction <maximumf>, %48, %cst_15 [1] : vector<2x12x8xf32> to vector<2x8xf32>
    %50 = vector.extract_strided_slice %5 {offsets = [0, 16], sizes = [1, 8], strides = [1, 1]} : vector<1x24xf32> to vector<1x8xf32>
    %51 = vector.broadcast %50 : vector<1x8xf32> to vector<2x8xf32>
    %52 = arith.addf %49, %51 : vector<2x8xf32>
    %cst_16 = arith.constant 0.000000e+00 : f32
    %53 = vector.broadcast %cst_16 : f32 to vector<2x8xf32>
    %54 = arith.maximumf %52, %53 : vector<2x8xf32>
    %55 = arith.truncf %54 : vector<2x8xf32> to vector<2x8xbf16>
    %56 = vector.extract_strided_slice %6 {offsets = [16, 0], sizes = [8, 128], strides = [1, 1]} : vector<24x128xbf16> to vector<8x128xbf16>
    %cst_17 = arith.constant dense<0.000000e+00> : vector<2x128xf32>
    %57 = tpu.matmul %55, %56, %cst_17 {dimension_numbers = #tpu.dot_dimension_numbers<[1], [0], [0], [1], [0, 0, 1, 1], [], []>} : vector<2x8xbf16>, vector<8x128xbf16>, vector<2x128xf32> -> vector<2x128xf32>
    %58 = arith.addf %39, %57 : vector<2x128xf32>
    %c0_18 = arith.constant 0 : index
    %c0_19 = arith.constant 0 : index
    %59 = vector.load %arg5[%c0_18, %c0_19] : memref<1x128xf32, #tpu.memory_space<vmem>>, vector<1x128xf32>
    %60 = vector.broadcast %59 : vector<1x128xf32> to vector<2x128xf32>
    %61 = arith.addf %58, %60 : vector<2x128xf32>
    %c0_20 = arith.constant 0 : index
    %c0_21 = arith.constant 0 : index
    %62 = vector.load %arg6[%c0_20, %c0_21] : memref<2x128xf32, #tpu.memory_space<vmem>>, vector<2x128xf32>
    tpu.vector_store %arg6[%c0_20, %c0_21], %61 {strides = array<i32>} : memref<2x128xf32, #tpu.memory_space<vmem>>, vector<2x128xf32>,
    return
  }
  func.func @transform_0(%arg0: i32) -> (i32, i32, i32) {
    %c0_i32 = arith.constant 0 : i32
    %c0_i32_0 = arith.constant 0 : i32
    %c0_i32_1 = arith.constant 0 : i32
    return %arg0, %c0_i32, %c0_i32_0 : i32, i32, i32
  }
  func.func @transform_1(%arg0: i32) -> (i32, i32) {
    %c0_i32 = arith.constant 0 : i32
    %c0_i32_0 = arith.constant 0 : i32
    %c0_i32_1 = arith.constant 0 : i32
    return %c0_i32, %c0_i32_0 : i32, i32
  }
  func.func @transform_2(%arg0: i32) -> (i32, i32) {
    %c0_i32 = arith.constant 0 : i32
    %c0_i32_0 = arith.constant 0 : i32
    %c0_i32_1 = arith.constant 0 : i32
    return %c0_i32, %c0_i32_0 : i32, i32
  }
  func.func @transform_3(%arg0: i32) -> (i32, i32) {
    %c0_i32 = arith.constant 0 : i32
    %c0_i32_0 = arith.constant 0 : i32
    %c0_i32_1 = arith.constant 0 : i32
    return %c0_i32, %c0_i32_0 : i32, i32
  }
  func.func @transform_4(%arg0: i32) -> (i32, i32) {
    %c0_i32 = arith.constant 0 : i32
    %c0_i32_0 = arith.constant 0 : i32
    %c0_i32_1 = arith.constant 0 : i32
    return %c0_i32, %c0_i32_0 : i32, i32
  }
  func.func @transform_5(%arg0: i32) -> (i32, i32) {
    %c0_i32 = arith.constant 0 : i32
    %c0_i32_0 = arith.constant 0 : i32
    return %arg0, %c0_i32 : i32, i32
  }
}

</mosaic_0001>

<bundles_post_ra>
// kernel: tpu_custom_call.1
= control target key start
LH: loop header
LB: loop body
LE: loop exit
PB: predicated region body
PF: predicated region fallthrough
CT: control target
= control target key end

     0   :  { %10 = vsyncpa [#allocation3], 0  ;;  %s874_s0 = inlined_call_operand.hbm [shape: bf16[2,16,32], index: 0, kind: input, shape index: {}]   ;;  %s875_s1 = inlined_call_operand.hbm [shape: bf16[32,96], index: 1, kind: input, shape index: {}]   ;;  %s876_s2 = inlined_call_operand.vmem [shape: f32[1,24], index: 2, kind: input, shape index: {}]   ;;  %s877_s3 = inlined_call_operand.hbm [shape: bf16[24,128], index: 3, kind: input, shape index: {}]   ;;  %s878_s4 = inlined_call_operand.vmem [shape: f32[1,128], index: 4, kind: input, shape index: {}]   ;;  %s879_s5 = inlined_call_operand.hbm [shape: f32[2,128], index: 5, kind: output, shape index: {}]  }
   0x1   :  { %11 = vsyncpa [#allocation6], 0 }
   0x2   :  { %12 = vsyncpa [#allocation4], 0  ;;  %s689_s18 = smov [#allocation5]   ;;  %s690_s20 = smov [#allocation2]  }
   0x3   :  { %s30_s19 = sshll.u32 %s689_s18, 4  ;;  %s18_s21 = sshll.u32 %s690_s20, 4  ;;  %s31_s19 = int_to_ptr.vmem [resolvable:$true] %s30_s19  ;;  %s734_s21 = int_to_ptr.vmem [resolvable:$true] %s18_s21 }
   0x4   :  { %s595_s24 = scalar_lea.hbm %s875_s1, 256 }
   0x5   :  { %p596_p0 = scmp.ne.s32.totalorder %s875_s1, %s595_s24  ;;  %p599_p1 = scmp.lt.u32.totalorder %s595_s24, %s875_s1 }
   0x7   :  { %p601_p2 = pnand %p599_p1, %p596_p0 }
   0x9   :  { %604 = shalt.err (!%p601_p2)
}
   0xa   :  { %s605_s29 = scalar_lea.vmem %s31_s19, 256  ;;  %p610_p4 = scmp.lt.s32.totalorder %s31_s19, %s31_s19 }
   0xb   :  { %p606_p3 = scmp.ne.s32.totalorder %s31_s19, %s605_s29  ;;  %p611_p5 = scmp.lt.s32.totalorder %s605_s29, %s605_s29 }
   0xd   :  { %p612_p6 = por %p611_p5, %p610_p4 }
   0xf   :  { %p613_p7 = pnand %p612_p6, %p606_p3 }
  0x11   :  { %616 = shalt.err (!%p613_p7)
}
  0x12   :  { %s691_s30 = smov 64   ;;  %s692_s6 = smov 4  }
  0x13   :  { %36 = dma.hbm_to_vmem [thread:$0]  %s875_s1, 256, %s31_s19, [#allocation6], %s691_s30, %s691_s30, %s692_s6  }
  0x14   :  { %s617_s11 = scalar_lea.hbm %s874_s0, 256 }
  0x15   :  { %p618_p8 = scmp.ne.s32.totalorder %s874_s0, %s617_s11  ;;  %p621_p9 = scmp.lt.u32.totalorder %s617_s11, %s874_s0 }
  0x17   :  { %p623_p10 = pnand %p621_p9, %p618_p8 }
  0x19   :  { %626 = shalt.err (!%p623_p10)
}
  0x1a   :  { %s627_s16 = scalar_lea.vmem %s734_s21, 256  ;;  %p632_p12 = scmp.lt.s32.totalorder %s734_s21, %s734_s21 }
  0x1b   :  { %p628_p11 = scmp.ne.s32.totalorder %s734_s21, %s627_s16  ;;  %p633_p13 = scmp.lt.s32.totalorder %s627_s16, %s627_s16 }
  0x1d   :  { %p634_p0 = por %p633_p13, %p632_p12 }
  0x1f   :  { %p635_p1 = pnand %p634_p0, %p628_p11 }
  0x21   :  { %638 = shalt.err (!%p635_p1)
}
  0x22   :  { %24 = dma.hbm_to_vmem [thread:$0]  %s874_s0, 256, %s734_s21, [#allocation3], %s691_s30, %s691_s30, %s692_s6  }
  0x23   :  { %s693_s18 = smov [#allocation7]   ;;  %s639_s23 = scalar_lea.hbm %s877_s3, 192 }
  0x24   :  { %s44_s19 = sshll.u32 %s693_s18, 4  ;;  %p640_p2 = scmp.ne.s32.totalorder %s877_s3, %s639_s23  ;;  %s45_s19 = int_to_ptr.vmem [resolvable:$true] %s44_s19 }
  0x25   :  { %p643_p3 = scmp.lt.u32.totalorder %s639_s23, %s877_s3 }
  0x27   :  { %p645_p4 = pnand %p643_p3, %p640_p2 }
  0x29   :  { %648 = shalt.err (!%p645_p4)
}
  0x2a   :  { %s649_s28 = scalar_lea.vmem %s45_s19, 192  ;;  %p654_p6 = scmp.lt.s32.totalorder %s45_s19, %s45_s19 }
  0x2b   :  { %p650_p5 = scmp.ne.s32.totalorder %s45_s19, %s649_s28  ;;  %p655_p7 = scmp.lt.s32.totalorder %s649_s28, %s649_s28 }
  0x2d   :  { %p656_p8 = por %p655_p7, %p654_p6 }
  0x2f   :  { %p657_p9 = pnand %p656_p8, %p650_p5 }
  0x31   :  { %660 = shalt.err (!%p657_p9)
}
  0x32   :  { %50 = dma.hbm_to_vmem [thread:$0]  %s877_s3, 192, %s45_s19, [#allocation6], %s691_s30, %s691_s30, %s692_s6  }
  0x33   :  { %683 = dma.done.wait [#allocation3], 256  }
  0x34   :  { %684 = vsyncadd [#allocation3], 4294967040 }
  0x35   :  { %685 = dma.done.wait [#allocation6], 448  }
  0x36   :  { %686 = vsyncadd [#allocation6], 4294966848  ;;  %v591_v0 = vld [vmem:[#allocation5] sm:$0xff]   ;;  %v592_v1 = vld [vmem:[#allocation5 + $0x8] sm:$0xff]   ;;  %vm93_vm0 = vcmask 261120   ;;  %vm157_vm1 = vcmask 1046528  }
  0x37   :  { %550 = vmatprep.subr.bf16.mxu0 %v591_v0  ;;  %v593_v2 = vld [vmem:[#allocation2] sm:$0xff]   ;;  %v594_v3 = vld [vmem:[#allocation2 + $0x8] sm:$0xff]   ;;  %vm180_vm2 = vcmask 1045504   ;;  %vm235_vm3 = vcmask 1044480   ;;  %vm300_vm4 = vcmask 1043456   ;;  %s694_s3 = smov 112  }
  0x38   :  { %551 = vmatpush3.bf16.msra.mxu0 %v591_v0  ;;  %554 = vmatprep.mubr.msk.bf16.mxu0 %vm93_vm0, %v593_v2  ;;  %s695_s29 = smov 120   ;;  %s696_s30 = smov 104   ;;  %v819_v32 = vld [vmem:[%s876_s2] ss:$0 sm:$0xff]  ;;  %v151_v33 = vld [vmem:[#allocation7 + $0x4] sm:$0xf] }
  0x39   :  { %552 = vmatprep.subr.bf16.mxu0 %v592_v1  ;;  %s697_s6 = smov 96   ;;  %s698_s9 = smov 16   ;;  %v700_v34 = vmov 0.0   ;;  %v302_v35 = vsel %vm300_vm4, %v151_v33, 0  ;;  %vm701_vm5 = vmmov 0   ;;  %vm203_vm6 = vcmask 64512  }
  0x3a   :  { %s699_s10 = smov 40   ;;  %558 = vmatprep.subr.bf16.mxu1 %v700_v34  ;;  %560 = vmatprep.mubr.msk.bf16.mxu1 %vm701_vm5, %v700_v34  ;;  %vm205_vm7 = vcmask 62464   ;;  %vm260_vm8 = vcmask 258240   ;;  %vm258_vm9 = vcmask 261312   ;;  %vm419_vm10 = vcmask 523712   ;;  %s702_s2 = smov 72  }
  0x3b   :  { %559 = vmatpush3.bf16.msra.mxu1 %v302_v35  ;;  %vm421_vm11 = vcmask 519616   ;;  %vm292_vm12 = vcmask 1041409   ;;  %s703_s13 = smov [#allocation8]  }
  0x3c   :  { %553 = vmatpush3.bf16.msra.mxu0 %v592_v1  ;;  %564 = vmatprep.subr.bf16.mxu1 %v700_v34  ;;  %s519_s14 = sshll.u32 %s703_s13, 4  ;;  %s520_s14 = int_to_ptr.vmem [resolvable:$true] %s519_s14 }
  0x3d   :  { %570 = vmatprep.subr.bf16.mxu0 %v700_v34  ;;  %s661_s15 = scalar_lea.vmem %s520_s14, 32  ;;  %p666_p11 = scmp.lt.s32.totalorder %s520_s14, %s520_s14 }
  0x3e   :  { %p662_p10 = scmp.ne.s32.totalorder %s520_s14, %s661_s15  ;;  %p667_p12 = scmp.lt.s32.totalorder %s661_s15, %s661_s15 }
  0x3f   :  { %555 = vmatmul.mubr.msk.bf16.vlgmr.msra.gmra.mrb[0].mxu0 %vm93_vm0, %v594_v3 }
  0x40   :  { %572 = vmatprep.mubr.msk.bf16.mxu0 %vm701_vm5, %v700_v34  ;;  %p668_p13 = por %p667_p12, %p666_p11 }
  0x42   :  { %p669_p0 = pnand %p668_p13, %p662_p10 }
 0x112   :  { %v786_v4 = vpop.f32.mrb[0].mxu0 }
 0x113   :  { %v788_v5 = vpop.f32.mrb[1].mxu0  ;;  %v161_v6 = vrot.slane %v786_v4, 1  ;;  %v184_v7 = vrot.slane %v786_v4, 2  ;;  %v239_v8 = vrot.slane %v786_v4, 3  ;;  %v400_v13 = vrot.slane %v786_v4, 4 }
 0x114   :  { %v557_v9 = vpop.f32.mrb[2].mxu0  ;;  %v181_v10 = vrot.slane %v788_v5, 2  ;;  %v158_v11 = vrot.slane %v788_v5, 1  ;;  %v236_v12 = vrot.slane %v788_v5, 3  ;;  %v397_v26 = vrot.slane %v788_v5, 4 }
 0x115   :  { %v797_v14 = vpop.f32.mrb[3].mxu0  ;;  %v185_v15 = vrot.slane %v557_v9, 2  ;;  %v162_v16 = vrot.slane %v557_v9, 1  ;;  %v240_v17 = vrot.slane %v557_v9, 3  ;;  %v401_v18 = vrot.slane %v557_v9, 4 }
 0x116   :  { %v159_v19 = vrot.slane %v797_v14, 1  ;;  %v182_v20 = vrot.slane %v797_v14, 2  ;;  %v237_v21 = vrot.slane %v797_v14, 3  ;;  %v398_v22 = vrot.slane %v797_v14, 4 }
 0x117   :  { %193 = vrot.lane.b32.xlu1 %v185_v15, %s694_s3  ;;  %170 = vrot.lane.b32.xlu0 %v162_v16, %s695_s29  ;;  %v163_v23 = vsel %vm157_vm1, %v161_v6, %v162_v16  ;;  %v186_v24 = vsel %vm180_vm2, %v184_v7, %v185_v15  ;;  %v241_v25 = vsel %vm235_vm3, %v239_v8, %v240_v17 }
 0x118   :  { %v183_v27 = vsel %vm180_vm2, %v181_v10, %v182_v20  ;;  %v160_v28 = vsel %vm157_vm1, %v158_v11, %v159_v19  ;;  %v238_v29 = vsel %vm235_vm3, %v236_v12, %v237_v21  ;;  %v402_v30 = vsel %vm300_vm4, %v400_v13, %v401_v18 }
 0x119   :  { %v399_v31 = vsel %vm300_vm4, %v397_v26, %v398_v22 }
 0x11b   :  { %248 = vrot.lane.b32.xlu1 %v240_v17, %s696_s30  ;;  %168 = vrot.lane.b32.xlu0 %v163_v23, %s695_s29 }
 0x11f   :  { %191 = vrot.lane.b32.xlu0 %v186_v24, %s694_s3  ;;  %166 = vrot.lane.b32.xlu1 %v159_v19, %s695_s29 }
 0x123   :  { %246 = vrot.lane.b32.xlu0 %v241_v25, %s696_s30  ;;  %189 = vrot.lane.b32.xlu1 %v182_v20, %s694_s3 }
 0x127   :  { %187 = vrot.lane.b32.xlu0 %v183_v27, %s694_s3  ;;  %164 = vrot.lane.b32.xlu1 %v160_v28, %s695_s29 }
 0x12b   :  { %242 = vrot.lane.b32.xlu0 %v238_v29, %s696_s30  ;;  %244 = vrot.lane.b32.xlu1 %v237_v21, %s696_s30 }
 0x12f   :  { %407 = vrot.lane.b32.xlu0 %v402_v30, %s697_s6  ;;  %409 = vrot.lane.b32.xlu1 %v401_v18, %s697_s6 }
 0x133   :  { %403 = vrot.lane.b32.xlu0 %v399_v31, %s697_s6  ;;  %405 = vrot.lane.b32.xlu1 %v398_v22, %s697_s6 }
 0x137   :  { %278 = vrot.lane.b32.xlu0 %v819_v32, %s698_s9  ;;  %439 = vrot.lane.b32.xlu1 %v819_v32, %s699_s10 }
 0x189   :  { %v194_v36 = vpop.permute.xlu1 %193  ;;  %v171_v37 = vpop.permute.xlu0 %170 }
 0x18a   :  { %v179_v38 = vadd.f32 %v557_v9, %v171_v37 }
 0x18c   :  { %v202_v41 = vadd.f32 %v194_v36, %v179_v38 }
 0x18d   :  { %v249_v39 = vpop.permute.xlu1 %248  ;;  %v169_v40 = vpop.permute.xlu0 %168 }
 0x18e   :  { %v178_v42 = vadd.f32 %v786_v4, %v169_v40  ;;  %v257_v46 = vadd.f32 %v249_v39, %v202_v41  ;;  %v215_v47 = vsel %vm205_vm7, %v202_v41, -inf }
 0x190   :  { %v270_v54 = vsel %vm260_vm8, %v257_v46, -inf }
 0x191   :  { %v192_v43 = vpop.permute.xlu0 %191  ;;  %v167_v44 = vpop.permute.xlu1 %166 }
 0x192   :  { %v201_v45 = vadd.f32 %v192_v43, %v178_v42  ;;  %v177_v55 = vadd.f32 %v167_v44, %v797_v14 }
 0x194   :  { %v214_v48 = vsel %vm203_vm6, %v201_v45, -inf }
 0x195   :  { %v216_v49 = vmax.f32 %v214_v48, %v215_v47  ;;  %v247_v50 = vpop.permute.xlu0 %246  ;;  %v190_v51 = vpop.permute.xlu1 %189 }
 0x196   :  { %v256_v52 = vadd.f32 %v247_v50, %v201_v45  ;;  %v200_v61 = vadd.f32 %v190_v51, %v177_v55 }
 0x197   :  { %v217_v53 = vrot.slane %v216_v49, 4 }
 0x198   :  { %v269_v56 = vsel %vm258_vm9, %v256_v52, -inf  ;;  %v206_v7 = vsel %vm205_vm7, %v200_v61, -inf }
 0x199   :  { %v218_v57 = vmax.f32 %v216_v49, %v217_v53  ;;  %v271_v58 = vmax.f32 %v269_v56, %v270_v54  ;;  %v188_v59 = vpop.permute.xlu0 %187  ;;  %v165_v60 = vpop.permute.xlu1 %164 }
 0x19a   :  { %v176_v62 = vadd.f32 %v165_v60, %v788_v5 }
 0x19b   :  { %v219_v63 = vrot.slane %v218_v57, 2  ;;  %v272_v0 = vrot.slane %v271_v58, 4 }
 0x19c   :  { %v199_v1 = vadd.f32 %v188_v59, %v176_v62 }
 0x19d   :  { %v220_v2 = vmax.f32 %v218_v57, %v219_v63  ;;  %v273_v3 = vmax.f32 %v271_v58, %v272_v0  ;;  %v243_v4 = vpop.permute.xlu0 %242  ;;  %v245_v6 = vpop.permute.xlu1 %244 }
 0x19e   :  { %v204_v8 = vsel %vm203_vm6, %v199_v1, -inf  ;;  %v254_v9 = vadd.f32 %v243_v4, %v199_v1  ;;  %v255_v10 = vadd.f32 %v245_v6, %v200_v61 }
 0x19f   :  { %v221_v11 = vrot.slane %v220_v2, 1  ;;  %v274_v12 = vrot.slane %v273_v3, 2  ;;  %v207_v13 = vmax.f32 %v204_v8, %v206_v7 }
 0x1a0   :  { %v259_v14 = vsel %vm258_vm9, %v254_v9, -inf  ;;  %v261_v5 = vsel %vm260_vm8, %v255_v10, -inf }
 0x1a1   :  { %v222_v15 = vmax.f32 %v220_v2, %v221_v11  ;;  %v208_v16 = vrot.slane %v207_v13, 4  ;;  %v262_v17 = vmax.f32 %v259_v14, %v261_v5  ;;  %v408_v18 = vpop.permute.xlu0 %407  ;;  %v410_v19 = vpop.permute.xlu1 %409  ;;  %v275_v20 = vmax.f32 %v273_v3, %v274_v12  ;;  %v152_v2 = vld [vmem:[#allocation7 + $0x8] sm:$0xf] }
 0x1a2   :  { %v417_v21 = vadd.f32 %v408_v18, %v256_v52  ;;  %v418_v22 = vadd.f32 %v410_v19, %v257_v46  ;;  %v461_v6 = vsel %vm300_vm4, %v152_v2, 0 }
 0x1a3   :  { %v230_v23 = vadd.f32 %v819_v32, %v222_v15  ;;  %v209_v24 = vmax.f32 %v207_v13, %v208_v16  ;;  %v263_v25 = vrot.slane %v262_v17, 4  ;;  %v276_v28 = vrot.slane %v275_v20, 1  ;;  %571 = vmatpush3.bf16.msra.mxu0 %v461_v6 }
 0x1a4   :  { %v430_v26 = vsel %vm419_vm10, %v417_v21, -inf  ;;  %v431_v27 = vsel %vm421_vm11, %v418_v22, -inf }
 0x1a5   :  { %v210_v29 = vrot.slane %v209_v24, 2  ;;  %v264_v30 = vmax.f32 %v262_v17, %v263_v25  ;;  %v432_v31 = vmax.f32 %v430_v26, %v431_v27  ;;  %v404_v33 = vpop.permute.xlu0 %403  ;;  %v406_v35 = vpop.permute.xlu1 %405  ;;  %v232_v38 = vmax.f32 %v230_v23, 0.0 }
 0x1a6   :  { %v415_v36 = vadd.f32 %v404_v33, %v254_v9  ;;  %v416_v37 = vadd.f32 %v406_v35, %v255_v10  ;;  %v277_v44 = vmax.f32 %v275_v20, %v276_v28 }
 0x1a7   :  { %v211_v39 = vmax.f32 %v209_v24, %v210_v29  ;;  %v265_v40 = vrot.slane %v264_v30, 2  ;;  %v433_v41 = vrot.slane %v432_v31, 4  ;;  %v234_v51 = vpack.c.bf16 %v232_v38, %v232_v38 }
 0x1a8   :  { %v420_v42 = vsel %vm419_vm10, %v415_v36, -inf  ;;  %v422_v43 = vsel %vm421_vm11, %v416_v37, -inf }
 0x1a9   :  { %v212_v45 = vrot.slane %v211_v39, 1  ;;  %v434_v46 = vmax.f32 %v432_v31, %v433_v41  ;;  %v423_v47 = vmax.f32 %v420_v42, %v422_v43  ;;  %v279_v48 = vpop.permute.xlu0 %278  ;;  %v266_v49 = vmax.f32 %v264_v30, %v265_v40  ;;  %v440_v4 = vpop.permute.xlu1 %439  ;;  %v150_v31 = vld [vmem:[#allocation7] sm:$0xf] }
 0x1aa   :  { %v282_v50 = vadd.f32 %v279_v48, %v277_v44  ;;  %v347_v62 = vunpack.c.l.b16 %v234_v51  ;;  %v355_v33 = vsel %vm300_vm4, %v150_v31, 0 }
 0x1ab   :  { %v213_v52 = vmax.f32 %v211_v39, %v212_v45  ;;  %v435_v53 = vrot.slane %v434_v46, 2  ;;  %v424_v54 = vrot.slane %v423_v47, 4  ;;  %v267_v55 = vrot.slane %v266_v49, 1 }
 0x1ac   :  { %v284_v56 = vmax.f32 %v282_v50, 0.0  ;;  %v348_v14 = vrot.slane %v347_v62, 7 }
 0x1ad   :  { %v229_v57 = vadd.f32 %v819_v32, %v213_v52  ;;  %v425_v58 = vmax.f32 %v423_v47, %v424_v54  ;;  %v436_v59 = vmax.f32 %v434_v46, %v435_v53  ;;  %v268_v60 = vmax.f32 %v266_v49, %v267_v55 }
 0x1ae   :  { %v286_v61 = vpack.c.bf16 %v284_v56, %v284_v56 }
 0x1af   :  { %v231_v63 = vmax.f32 %v229_v57, 0.0  ;;  %v426_v0 = vrot.slane %v425_v58, 2  ;;  %v437_v1 = vrot.slane %v436_v59, 1  ;;  %v281_v3 = vadd.f32 %v279_v48, %v268_v60 }
 0x1b0   :  { %v290_v11 = vunpack.c.l.b16 %v286_v61 }
 0x1b1   :  { %v427_v7 = vmax.f32 %v425_v58, %v426_v0  ;;  %v438_v8 = vmax.f32 %v436_v59, %v437_v1  ;;  %v233_v9 = vpack.c.bf16 %v231_v63, %v231_v63  ;;  %v283_v10 = vmax.f32 %v281_v3, 0.0 }
 0x1b2   :  { %v291_v19 = vrot.slane %v290_v11, 7 }
 0x1b3   :  { %v428_v32 = vrot.slane %v427_v7, 1  ;;  %v443_v12 = vadd.f32 %v440_v4, %v438_v8  ;;  %v346_v13 = vunpack.c.l.b16 %v233_v9  ;;  %v285_v5 = vpack.c.bf16 %v283_v10, %v283_v10 }
 0x1b5   :  { %v429_v15 = vmax.f32 %v427_v7, %v428_v32  ;;  %v445_v16 = vmax.f32 %v443_v12, 0.0  ;;  %v349_v17 = vsel %vm292_vm12, %v348_v14, %v346_v13  ;;  %v289_v18 = vunpack.c.l.b16 %v285_v5 }
 0x1b6   :  { %v350_v36 = vpack.c.b16 %v349_v17, %v349_v17 }
 0x1b7   :  { %v442_v20 = vadd.f32 %v440_v4, %v429_v15  ;;  %v447_v21 = vpack.c.bf16 %v445_v16, %v445_v16  ;;  %v293_v22 = vsel %vm292_vm12, %v291_v19, %v289_v18 }
 0x1b8   :  { %v294_v25 = vpack.c.b16 %v293_v22, %v293_v22 }
 0x1b9   :  { %v444_v23 = vmax.f32 %v442_v20, 0.0  ;;  %v451_v24 = vunpack.c.l.b16 %v447_v21 }
 0x1ba   :  { %295 = vrot.lane.b32.xlu0 %v294_v25, %s696_s30 }
 0x1bb   :  { %v446_v26 = vpack.c.bf16 %v444_v23, %v444_v23  ;;  %v452_v28 = vrot.slane %v451_v24, 7 }
 0x1bd   :  { %v450_v27 = vunpack.c.l.b16 %v446_v26 }
 0x1bf   :  { %v453_v29 = vsel %vm292_vm12, %v452_v28, %v450_v27 }
 0x1c0   :  { %v454_v30 = vpack.c.b16 %v453_v29, %v453_v29 }
 0x1c2   :  { %455 = vrot.lane.b32.xlu1 %v454_v30, %s702_s2 }
 0x22c   :  { %v296_v35 = vpop.permute.xlu0 %295 }
 0x22d   :  { %561 = vmatmul.mubr.msk.bf16.vlgmr.msra.gmra.mrb[0].mxu1 %vm203_vm6, %v296_v35 }
 0x22e   :  { %565 = vmatpush3.bf16.msra.mxu1 %v355_v33  ;;  %566 = vmatprep.mubr.msk.bf16.mxu1 %vm701_vm5, %v700_v34  ;;  %v539_v34 = vld [vmem:[%s878_s4] ss:$0 sm:$0xff] }
 0x234   :  { %v456_v37 = vpop.permute.xlu1 %455 }
 0x235   :  { %573 = vmatmul.mubr.msk.bf16.vlgmr.msra.gmra.mrb[4].mxu0 %vm203_vm6, %v456_v37  ;;  %567 = vmatmul.mubr.msk.bf16.vlgmr.msra.gmra.mrb[4].mxu1 %vm203_vm6, %v350_v36 }
 0x300   :  { %v338_v38 = vpop.f32.mrb[0].mxu1 }
 0x301   :  { %v562_v39 = vpop.f32.mrb[1].mxu1 }
 0x302   :  { %v341_v40 = vpop.f32.mrb[2].mxu1 }
 0x303   :  { %v563_v41 = vpop.f32.mrb[3].mxu1 }
 0x308   :  { %v497_v42 = vpop.f32.mrb[4].mxu0  ;;  %v391_v43 = vpop.f32.mrb[4].mxu1 }
 0x309   :  { %v574_v44 = vpop.f32.mrb[5].mxu0  ;;  %v392_v45 = vadd.f32 %v391_v43, %v338_v38  ;;  %v568_v46 = vpop.f32.mrb[5].mxu1 }
 0x30a   :  { %v500_v47 = vpop.f32.mrb[6].mxu0  ;;  %v394_v48 = vpop.f32.mrb[6].mxu1 }
 0x30b   :  { %v575_v49 = vpop.f32.mrb[7].mxu0  ;;  %v503_v50 = vadd.f32 %v497_v42, %v392_v45  ;;  %v569_v51 = vpop.f32.mrb[7].mxu1 }
 0x30d   :  { %v511_v52 = vadd.f32 %v539_v34, %v503_v50 }
 0x30f   :  { %512 = vst [vmem:[#allocation8] sm:$0x3] %v511_v52 }
 0x310   :  { %672 = shalt.err (!%p669_p0)
}
 0x311   :  { %s673_s4 = scalar_lea.hbm %s879_s5, 32 }
 0x312   :  { %p674_p1 = scmp.ne.s32.totalorder %s879_s5, %s673_s4  ;;  %p677_p2 = scmp.lt.u32.totalorder %s673_s4, %s879_s5 }
 0x314   :  { %p679_p3 = pnand %p677_p2, %p674_p1 }
 0x316   :  { %682 = shalt.err (!%p679_p3)
}
 0x317   :  { %522 = dma.vmem_to_hbm [thread:$0]  %s520_s14, 32, %s879_s5, [#allocation4]  }
 0x318   :  { %687 = dma.done.wait [#allocation4], 32  }
 0x319   :  { %688 = vsyncadd [#allocation4], 4294967264 }
 0x31a   :  { %526 = vsyncpa [#allocation3], 1 }
 0x31b   :  { %527 = vsyncpa [#allocation6], 1 }
 0x31c   :  { %528 = vsyncpa [#allocation4], 1 }

</bundles_post_ra>
